<compile_context>
chip_gen: v6e
topology: v6e:2x2x1
jax: 0.10.0
libtpu: 0.0.40
codegen_flags: <defaults>
</compile_context>

<pallas_src>
import jax
import jax.numpy as jnp
import numpy as np
from jax.experimental import pallas as pl
from jax.experimental.pallas import tpu as pltpu

# ----------------------------- model dims -----------------------------
B = 2
C_IN = 3
FOV = 5
OD = 8                       # hyper_hidden_dim (conv out channels)
KH = KW = 3
OH = OW = FOV - 2            # 3
CONV_OUT = OH * OW * OD      # self.out = 72
VEC_DIM = 6                  # obs_shape[-2]
N_ACTIONS = 5
VEC_IN = VEC_DIM + N_ACTIONS           # 11 (mlp1 input)
H = 32                       # rnn_hidden_dim
MLP_OUT = 10
PIX_LEN = C_IN * FOV * FOV   # 75
IN_DIM = PIX_LEN + VEC_IN    # 86
RNN_IN = CONV_OUT + MLP_OUT  # 82

# --------------------- packed-parameter row layout ---------------------
# One (W_ROWS, W_COLS) f32 buffer; each block starts at a multiple of 8 rows.
R_CONV = 0      # (75, 72)  unrolled conv matrix (NCHW-flatten column order)
R_IHP  = 80     # (72, 96)  W_ih[:, :72].T  (pixel part of GRU input weights)
R_IHV  = 152    # (10, 96)  W_ih[:, 72:].T  (vec part)
R_HH   = 168    # (32, 96)  W_hh.T
R_MLP  = 200    # (11, 10)  mlp1 weight.T
R_FC   = 216    # (32, 5)   fc1 weight.T
R_B    = 248    # 5 bias rows: conv(72), mlp(10), b_ih(96), b_hh(96), fc(5)
W_ROWS = 256
W_COLS = 128


def _vmem_spec():
    return pl.BlockSpec(memory_space=pltpu.MemorySpace.VMEM)


# ----------------------- single fused forward kernel -----------------------
def crnn_kernel(x_ref, h_ref, w_ref, q_ref, hout_ref):
    x = x_ref[...]                        # (B, 86)
    pixel = x[:, :PIX_LEN]                # (B, 75)
    vec = x[:, PIX_LEN:]                  # (B, 11)
    h_in = h_ref[...]                     # (B, 32)

    # packed biases (kept 2D so they broadcast over the batch sublanes)
    b_conv = w_ref[R_B + 0:R_B + 1, :CONV_OUT]
    b_mlp = w_ref[R_B + 1:R_B + 2, :MLP_OUT]
    b_ih = w_ref[R_B + 2:R_B + 3, :3 * H]
    b_hh = w_ref[R_B + 3:R_B + 4, :3 * H]
    b_fc = w_ref[R_B + 4:R_B + 5, :N_ACTIONS]

    # conv (as unrolled dense matmul, NCHW-flatten column order) + ReLU
    conv = jnp.maximum(
        jnp.dot(pixel, w_ref[R_CONV:R_CONV + PIX_LEN, :CONV_OUT],
                preferred_element_type=jnp.float32) + b_conv, 0.0)
    # vec = relu(mlp1(vec))
    vec_h = jnp.maximum(
        jnp.dot(vec, w_ref[R_MLP:R_MLP + VEC_IN, :MLP_OUT],
                preferred_element_type=jnp.float32) + b_mlp, 0.0)

    # GRUCell: gi from concat([conv, vec_h]) done as split matmuls (no concat)
    gi = (jnp.dot(conv, w_ref[R_IHP:R_IHP + CONV_OUT, :3 * H],
                  preferred_element_type=jnp.float32)
          + jnp.dot(vec_h, w_ref[R_IHV:R_IHV + MLP_OUT, :3 * H],
                    preferred_element_type=jnp.float32)
          + b_ih)
    gh = jnp.dot(h_in, w_ref[R_HH:R_HH + H, :3 * H],
                 preferred_element_type=jnp.float32) + b_hh

    # PyTorch GRUCell gate order: r, z, n
    r = jax.nn.sigmoid(gi[:, :H] + gh[:, :H])
    z = jax.nn.sigmoid(gi[:, H:2 * H] + gh[:, H:2 * H])
    n = jnp.tanh(gi[:, 2 * H:3 * H] + r * gh[:, 2 * H:3 * H])
    h_new = (1.0 - z) * n + z * h_in

    hout_ref[...] = h_new
    q_ref[...] = (jnp.dot(h_new, w_ref[R_FC:R_FC + H, :N_ACTIONS],
                          preferred_element_type=jnp.float32) + b_fc)


def crnn_forward(inputs, hidden_state, params):
    h_in = hidden_state.reshape(-1, H)
    q, h = pl.pallas_call(
        crnn_kernel,
        out_shape=(jax.ShapeDtypeStruct((inputs.shape[0], N_ACTIONS), jnp.float32),
                   jax.ShapeDtypeStruct((inputs.shape[0], H), jnp.float32)),
        in_specs=[_vmem_spec()] * 3,
        out_specs=(_vmem_spec(), _vmem_spec()),
    )(inputs, h_in, params['w_pack'])
    return q, h


# --------------------- deterministic parameter init ---------------------
def _unroll_conv(w_conv_np):
    """Dense (75, 72) matrix equivalent to the 3x3/s1 VALID conv, columns in
    PyTorch NCHW flatten order (o*9 + oh*3 + ow)."""
    W = np.zeros((PIX_LEN, CONV_OUT), np.float32)
    for o in range(OD):
        for c in range(C_IN):
            for kh in range(KH):
                for kw in range(KW):
                    for oh in range(OH):
                        for ow in range(OW):
                            row = c * FOV * FOV + (oh + kh) * FOV + (ow + kw)
                            col = o * OH * OW + oh * OW + ow
                            W[row, col] += w_conv_np[o, c, kh, kw]
    return W


def init_params(key):
    ks = jax.random.split(key, 10)
    s = 0.1
    w_conv = s * jax.random.normal(ks[0], (OD, C_IN, KH, KW), jnp.float32)
    b_conv = s * jax.random.normal(ks[1], (OD,), jnp.float32)
    w_mlp = s * jax.random.normal(ks[2], (MLP_OUT, VEC_IN), jnp.float32)
    b_mlp = s * jax.random.normal(ks[3], (MLP_OUT,), jnp.float32)
    w_ih = s * jax.random.normal(ks[4], (3 * H, RNN_IN), jnp.float32)
    b_ih = s * jax.random.normal(ks[5], (3 * H,), jnp.float32)
    w_hh = s * jax.random.normal(ks[6], (3 * H, H), jnp.float32)
    b_hh = s * jax.random.normal(ks[7], (3 * H,), jnp.float32)
    w_fc = s * jax.random.normal(ks[8], (N_ACTIONS, H), jnp.float32)
    b_fc = s * jax.random.normal(ks[9], (N_ACTIONS,), jnp.float32)

    p = dict(w_conv=w_conv, b_conv=b_conv, w_mlp=w_mlp, b_mlp=b_mlp,
             w_ih=w_ih, b_ih=b_ih, w_hh=w_hh, b_hh=b_hh,
             w_fc=w_fc, b_fc=b_fc)

    # ---- pack every parameter into a single (256, 128) VMEM buffer ----
    wp = np.zeros((W_ROWS, W_COLS), np.float32)
    wp[R_CONV:R_CONV + PIX_LEN, :CONV_OUT] = _unroll_conv(np.asarray(w_conv))
    wp[R_IHP:R_IHP + CONV_OUT, :3 * H] = np.asarray(w_ih)[:, :CONV_OUT].T
    wp[R_IHV:R_IHV + MLP_OUT, :3 * H] = np.asarray(w_ih)[:, CONV_OUT:].T
    wp[R_HH:R_HH + H, :3 * H] = np.asarray(w_hh).T
    wp[R_MLP:R_MLP + VEC_IN, :MLP_OUT] = np.asarray(w_mlp).T
    wp[R_FC:R_FC + H, :N_ACTIONS] = np.asarray(w_fc).T
    wp[R_B + 0, :CONV_OUT] = np.repeat(np.asarray(b_conv), OH * OW)  # NCHW flatten
    wp[R_B + 1, :MLP_OUT] = np.asarray(b_mlp)
    wp[R_B + 2, :3 * H] = np.asarray(b_ih)
    wp[R_B + 3, :3 * H] = np.asarray(b_hh)
    wp[R_B + 4, :N_ACTIONS] = np.asarray(b_fc)
    p['w_pack'] = jnp.asarray(wp)
    return p


# --------------------------- pure-JAX reference ---------------------------
def reference_forward(inputs, hidden_state, p):
    pixel = inputs[:, :PIX_LEN].reshape(-1, C_IN, FOV, FOV)
    conv = jax.lax.conv_general_dilated(
        pixel, p['w_conv'], window_strides=(1, 1), padding='VALID',
        dimension_numbers=('NCHW', 'OIHW', 'NCHW'))
    conv = jax.nn.relu(conv + p['b_conv'][None, :, None, None])
    pixel_flat = conv.reshape(-1, CONV_OUT)
    vec = inputs[:, PIX_LEN:]
    vec_h = jax.nn.relu(vec @ p['w_mlp'].T + p['b_mlp'])
    x = jnp.concatenate([pixel_flat, vec_h], axis=1)
    h_in = hidden_state.reshape(-1, H)
    gi = x @ p['w_ih'].T + p['b_ih']
    gh = h_in @ p['w_hh'].T + p['b_hh']
    r = jax.nn.sigmoid(gi[:, :H] + gh[:, :H])
    z = jax.nn.sigmoid(gi[:, H:2 * H] + gh[:, H:2 * H])
    n = jnp.tanh(gi[:, 2 * H:] + r * gh[:, 2 * H:])
    h = (1.0 - z) * n + z * h_in
    q = h @ p['w_fc'].T + p['b_fc']
    return q, h


if __name__ == "__main__":
    key = jax.random.PRNGKey(0)
    k_in, k_h, k_p = jax.random.split(key, 3)
    params = init_params(k_p)
    inputs = jax.random.normal(k_in, (B, IN_DIM), jnp.float32)
    hidden = jax.random.normal(k_h, (B, H), jnp.float32)

    q, h = crnn_forward(inputs, hidden, params)
    q = jax.block_until_ready(q)
    h = jax.block_until_ready(h)

    q_ref, h_ref = reference_forward(inputs, hidden, params)
    assert q.shape == (B, N_ACTIONS) and h.shape == (B, H)
    assert jnp.allclose(q, q_ref, atol=2e-3, rtol=2e-3)
    assert jnp.allclose(h, h_ref, atol=2e-3, rtol=2e-3)
    print("KERNEL_OK")
</pallas_src>

<mosaic_0001>
module attributes {stable_mosaic.version = 11 : i64} {
  func.func @crnn_kernel(%arg0: memref<2x86xf32, #tpu.memory_space<vmem>>, %arg1: memref<2x32xf32, #tpu.memory_space<vmem>>, %arg2: memref<256x128xf32, #tpu.memory_space<vmem>>, %arg3: memref<2x5xf32, #tpu.memory_space<vmem>>, %arg4: memref<2x32xf32, #tpu.memory_space<vmem>>) attributes {dimension_semantics = [], scalar_prefetch = 0 : i64, scratch_operands = 0 : i64, tpu.core_type = #tpu.core_type<tc>} {
    %c0 = arith.constant 0 : index
    %c0_0 = arith.constant 0 : index
    %0 = vector.load %arg0[%c0, %c0_0] : memref<2x86xf32, #tpu.memory_space<vmem>>, vector<2x86xf32>
    %1 = vector.extract_strided_slice %0 {offsets = [0, 0], sizes = [2, 75], strides = [1, 1]} : vector<2x86xf32> to vector<2x75xf32>
    %2 = vector.extract_strided_slice %0 {offsets = [0, 75], sizes = [2, 11], strides = [1, 1]} : vector<2x86xf32> to vector<2x11xf32>
    %c0_1 = arith.constant 0 : index
    %c0_2 = arith.constant 0 : index
    %3 = vector.load %arg1[%c0_1, %c0_2] : memref<2x32xf32, #tpu.memory_space<vmem>>, vector<2x32xf32>
    %c248 = arith.constant 248 : index
    %c0_3 = arith.constant 0 : index
    %4 = vector.load %arg2[%c248, %c0_3] : memref<256x128xf32, #tpu.memory_space<vmem>>, vector<1x72xf32>
    %c249 = arith.constant 249 : index
    %c0_4 = arith.constant 0 : index
    %5 = vector.load %arg2[%c249, %c0_4] : memref<256x128xf32, #tpu.memory_space<vmem>>, vector<1x10xf32>
    %c250 = arith.constant 250 : index
    %c0_5 = arith.constant 0 : index
    %6 = vector.load %arg2[%c250, %c0_5] : memref<256x128xf32, #tpu.memory_space<vmem>>, vector<1x96xf32>
    %c251 = arith.constant 251 : index
    %c0_6 = arith.constant 0 : index
    %7 = vector.load %arg2[%c251, %c0_6] : memref<256x128xf32, #tpu.memory_space<vmem>>, vector<1x96xf32>
    %c252 = arith.constant 252 : index
    %c0_7 = arith.constant 0 : index
    %8 = vector.load %arg2[%c252, %c0_7] : memref<256x128xf32, #tpu.memory_space<vmem>>, vector<1x5xf32>
    %c0_8 = arith.constant 0 : index
    %c0_9 = arith.constant 0 : index
    %9 = vector.load %arg2[%c0_8, %c0_9] : memref<256x128xf32, #tpu.memory_space<vmem>>, vector<75x72xf32>
    %cst = arith.constant dense<0.000000e+00> : vector<2x72xf32>
    %10 = tpu.matmul %1, %9, %cst {dimension_numbers = #tpu.dot_dimension_numbers<[1], [0], [0], [1], [0, 0, 1, 1], [], []>} : vector<2x75xf32>, vector<75x72xf32>, vector<2x72xf32> -> vector<2x72xf32>
    %11 = vector.broadcast %4 : vector<1x72xf32> to vector<2x72xf32>
    %12 = arith.addf %10, %11 : vector<2x72xf32>
    %cst_10 = arith.constant 0.000000e+00 : f32
    %13 = vector.broadcast %cst_10 : f32 to vector<2x72xf32>
    %14 = arith.maximumf %12, %13 : vector<2x72xf32>
    %c200 = arith.constant 200 : index
    %c0_11 = arith.constant 0 : index
    %15 = vector.load %arg2[%c200, %c0_11] : memref<256x128xf32, #tpu.memory_space<vmem>>, vector<11x10xf32>
    %cst_12 = arith.constant dense<0.000000e+00> : vector<2x10xf32>
    %16 = tpu.matmul %2, %15, %cst_12 {dimension_numbers = #tpu.dot_dimension_numbers<[1], [0], [0], [1], [0, 0, 1, 1], [], []>} : vector<2x11xf32>, vector<11x10xf32>, vector<2x10xf32> -> vector<2x10xf32>
    %17 = vector.broadcast %5 : vector<1x10xf32> to vector<2x10xf32>
    %18 = arith.addf %16, %17 : vector<2x10xf32>
    %cst_13 = arith.constant 0.000000e+00 : f32
    %19 = vector.broadcast %cst_13 : f32 to vector<2x10xf32>
    %20 = arith.maximumf %18, %19 : vector<2x10xf32>
    %c80 = arith.constant 80 : index
    %c0_14 = arith.constant 0 : index
    %21 = vector.load %arg2[%c80, %c0_14] : memref<256x128xf32, #tpu.memory_space<vmem>>, vector<72x96xf32>
    %cst_15 = arith.constant dense<0.000000e+00> : vector<2x96xf32>
    %22 = tpu.matmul %14, %21, %cst_15 {dimension_numbers = #tpu.dot_dimension_numbers<[1], [0], [0], [1], [0, 0, 1, 1], [], []>} : vector<2x72xf32>, vector<72x96xf32>, vector<2x96xf32> -> vector<2x96xf32>
    %c152 = arith.constant 152 : index
    %c0_16 = arith.constant 0 : index
    %23 = vector.load %arg2[%c152, %c0_16] : memref<256x128xf32, #tpu.memory_space<vmem>>, vector<10x96xf32>
    %cst_17 = arith.constant dense<0.000000e+00> : vector<2x96xf32>
    %24 = tpu.matmul %20, %23, %cst_17 {dimension_numbers = #tpu.dot_dimension_numbers<[1], [0], [0], [1], [0, 0, 1, 1], [], []>} : vector<2x10xf32>, vector<10x96xf32>, vector<2x96xf32> -> vector<2x96xf32>
    %25 = arith.addf %22, %24 : vector<2x96xf32>
    %26 = vector.broadcast %6 : vector<1x96xf32> to vector<2x96xf32>
    %27 = arith.addf %25, %26 : vector<2x96xf32>
    %c168 = arith.constant 168 : index
    %c0_18 = arith.constant 0 : index
    %28 = vector.load %arg2[%c168, %c0_18] : memref<256x128xf32, #tpu.memory_space<vmem>>, vector<32x96xf32>
    %cst_19 = arith.constant dense<0.000000e+00> : vector<2x96xf32>
    %29 = tpu.matmul %3, %28, %cst_19 {dimension_numbers = #tpu.dot_dimension_numbers<[1], [0], [0], [1], [0, 0, 1, 1], [], []>} : vector<2x32xf32>, vector<32x96xf32>, vector<2x96xf32> -> vector<2x96xf32>
    %30 = vector.broadcast %7 : vector<1x96xf32> to vector<2x96xf32>
    %31 = arith.addf %29, %30 : vector<2x96xf32>
    %32 = vector.extract_strided_slice %27 {offsets = [0, 0], sizes = [2, 32], strides = [1, 1]} : vector<2x96xf32> to vector<2x32xf32>
    %33 = vector.extract_strided_slice %31 {offsets = [0, 0], sizes = [2, 32], strides = [1, 1]} : vector<2x96xf32> to vector<2x32xf32>
    %34 = arith.addf %32, %33 : vector<2x32xf32>
    %35 = arith.negf %34 : vector<2x32xf32>
    %36 = math.exp %35 : vector<2x32xf32>
    %cst_20 = arith.constant 1.000000e+00 : f32
    %37 = vector.broadcast %cst_20 : f32 to vector<2x32xf32>
    %38 = arith.addf %37, %36 : vector<2x32xf32>
    %39 = arith.divf %37, %38 : vector<2x32xf32>
    %40 = vector.extract_strided_slice %27 {offsets = [0, 32], sizes = [2, 32], strides = [1, 1]} : vector<2x96xf32> to vector<2x32xf32>
    %41 = vector.extract_strided_slice %31 {offsets = [0, 32], sizes = [2, 32], strides = [1, 1]} : vector<2x96xf32> to vector<2x32xf32>
    %42 = arith.addf %40, %41 : vector<2x32xf32>
    %43 = arith.negf %42 : vector<2x32xf32>
    %44 = math.exp %43 : vector<2x32xf32>
    %cst_21 = arith.constant 1.000000e+00 : f32
    %45 = vector.broadcast %cst_21 : f32 to vector<2x32xf32>
    %46 = arith.addf %45, %44 : vector<2x32xf32>
    %47 = arith.divf %45, %46 : vector<2x32xf32>
    %48 = vector.extract_strided_slice %27 {offsets = [0, 64], sizes = [2, 32], strides = [1, 1]} : vector<2x96xf32> to vector<2x32xf32>
    %49 = vector.extract_strided_slice %31 {offsets = [0, 64], sizes = [2, 32], strides = [1, 1]} : vector<2x96xf32> to vector<2x32xf32>
    %50 = arith.mulf %39, %49 : vector<2x32xf32>
    %51 = arith.addf %48, %50 : vector<2x32xf32>
    %52 = math.tanh %51 : vector<2x32xf32>
    %cst_22 = arith.constant 1.000000e+00 : f32
    %53 = vector.broadcast %cst_22 : f32 to vector<2x32xf32>
    %54 = arith.subf %53, %47 : vector<2x32xf32>
    %55 = arith.mulf %54, %52 : vector<2x32xf32>
    %56 = arith.mulf %47, %3 : vector<2x32xf32>
    %57 = arith.addf %55, %56 : vector<2x32xf32>
    %c0_23 = arith.constant 0 : index
    %c0_24 = arith.constant 0 : index
    %58 = vector.load %arg4[%c0_23, %c0_24] : memref<2x32xf32, #tpu.memory_space<vmem>>, vector<2x32xf32>
    tpu.vector_store %arg4[%c0_23, %c0_24], %57 {strides = array<i32>} : memref<2x32xf32, #tpu.memory_space<vmem>>, vector<2x32xf32>,
    %c216 = arith.constant 216 : index
    %c0_25 = arith.constant 0 : index
    %59 = vector.load %arg2[%c216, %c0_25] : memref<256x128xf32, #tpu.memory_space<vmem>>, vector<32x5xf32>
    %cst_26 = arith.constant dense<0.000000e+00> : vector<2x5xf32>
    %60 = tpu.matmul %57, %59, %cst_26 {dimension_numbers = #tpu.dot_dimension_numbers<[1], [0], [0], [1], [0, 0, 1, 1], [], []>} : vector<2x32xf32>, vector<32x5xf32>, vector<2x5xf32> -> vector<2x5xf32>
    %61 = vector.broadcast %8 : vector<1x5xf32> to vector<2x5xf32>
    %62 = arith.addf %60, %61 : vector<2x5xf32>
    %c0_27 = arith.constant 0 : index
    %c0_28 = arith.constant 0 : index
    %63 = vector.load %arg3[%c0_27, %c0_28] : memref<2x5xf32, #tpu.memory_space<vmem>>, vector<2x5xf32>
    tpu.vector_store %arg3[%c0_27, %c0_28], %62 {strides = array<i32>} : memref<2x5xf32, #tpu.memory_space<vmem>>, vector<2x5xf32>,
    return
  }
}

</mosaic_0001>

<bundles_post_ra>
// kernel: tpu_custom_call.1
= control target key start
LH: loop header
LB: loop body
LE: loop exit
PB: predicated region body
PF: predicated region fallthrough
CT: control target
= control target key end

     0   :  { %10 = vsyncpa [#allocation3], 0  ;;  %s998_s0 = inlined_call_operand.hbm [shape: f32[2,86], index: 0, kind: input, shape index: {}]   ;;  %s999_s1 = inlined_call_operand.hbm [shape: f32[2,32], index: 1, kind: input, shape index: {}]   ;;  %s1000_s2 = inlined_call_operand.hbm [shape: f32[256,128], index: 2, kind: input, shape index: {}]   ;;  %s1001_s3 = inlined_call_operand.hbm [shape: f32[2,5], index: 3, kind: output, shape index: {0}]   ;;  %s1002_s4 = inlined_call_operand.hbm [shape: f32[2,32], index: 4, kind: output, shape index: {1}]  }
   0x1   :  { %11 = vsyncpa [#allocation6], 0 }
   0x2   :  { %12 = vsyncpa [#allocation4], 0 }
   0x3   :  { %13 = vsyncpa [#allocation10], 0  ;;  %s896_s15 = smov [#allocation5]   ;;  %s897_s17 = smov [#allocation2]  }
   0x4   :  { %s30_s16 = sshll.u32 %s896_s15, 4  ;;  %s20_s18 = sshll.u32 %s897_s17, 4  ;;  %s31_s16 = int_to_ptr.vmem [resolvable:$true] %s30_s16  ;;  %s21_s18 = int_to_ptr.vmem [resolvable:$true] %s20_s18 }
   0x5   :  { %s796_s19 = scalar_lea.vmem %s31_s16, 32  ;;  %p801_p1 = scmp.lt.s32.totalorder %s31_s16, %s31_s16 }
   0x6   :  { %p797_p0 = scmp.ne.s32.totalorder %s31_s16, %s796_s19  ;;  %p802_p2 = scmp.lt.s32.totalorder %s796_s19, %s796_s19 }
   0x8   :  { %p803_p3 = por %p802_p2, %p801_p1 }
   0xa   :  { %p804_p4 = pnand %p803_p3, %p797_p0 }
   0xc   :  { %807 = shalt.err (!%p804_p4)
}
   0xd   :  { %33 = dma.hbm_to_vmem [thread:$0]  %s999_s1, 32, %s31_s16, [#allocation6]  }
   0xe   :  { %s816_s22 = scalar_lea.vmem %s21_s18, 32  ;;  %p821_p6 = scmp.lt.s32.totalorder %s21_s18, %s21_s18 }
   0xf   :  { %p817_p5 = scmp.ne.s32.totalorder %s21_s18, %s816_s22  ;;  %p822_p7 = scmp.lt.s32.totalorder %s816_s22, %s816_s22 }
  0x11   :  { %p823_p8 = por %p822_p7, %p821_p6 }
  0x13   :  { %p824_p9 = pnand %p823_p8, %p817_p5 }
  0x15   :  { %827 = shalt.err (!%p824_p9)
}
  0x16   :  { %23 = dma.hbm_to_vmem [thread:$0]  %s998_s0, 32, %s21_s18, [#allocation3]  }
  0x17   :  { %s898_s25 = smov [#allocation7]  }
  0x18   :  { %s39_s26 = sshll.u32 %s898_s25, 4  ;;  %s40_s26 = int_to_ptr.vmem [resolvable:$true] %s39_s26 }
  0x19   :  { %s836_s27 = scalar_lea.vmem %s40_s26, 4096  ;;  %p841_p11 = scmp.lt.s32.totalorder %s40_s26, %s40_s26 }
  0x1a   :  { %p837_p10 = scmp.ne.s32.totalorder %s40_s26, %s836_s27  ;;  %p842_p12 = scmp.lt.s32.totalorder %s836_s27, %s836_s27 }
  0x1c   :  { %p843_p13 = por %p842_p12, %p841_p11 }
  0x1e   :  { %p844_p0 = pnand %p843_p13, %p837_p10 }
  0x20   :  { %847 = shalt.err (!%p844_p0)
}
  0x21   :  { %s899_s1 = smov 128   ;;  %s900_s28 = smov 8  }
  0x22   :  { %45 = dma.hbm_to_vmem [thread:$0]  %s1000_s2, 4096, %s40_s26, [#allocation6], %s899_s1, %s899_s1, %s900_s28  }
  0x23   :  { %888 = dma.done.wait [#allocation3], 32  }
  0x24   :  { %889 = vsyncadd [#allocation3], 4294967264 }
  0x25   :  { %890 = dma.done.wait [#allocation6], 4128  }
  0x26   :  { %891 = vsyncadd [#allocation6], 4294963168  ;;  %v901_v0 = vmov 0.0   ;;  %vm902_vm0 = vmmov 0   ;;  %vm80_vm1 = vcmask 1042432   ;;  %v70_v3 = vld [vmem:[#allocation7 + $0x40] sm:$0xff] }
  0x27   :  { %689 = vmatprep.subr.mxu0 %v901_v0  ;;  %709 = vmatprep.mubr.msk.f32.mxu0 %vm902_vm0, %v901_v0  ;;  %v55_v1 = vld [vmem:[#allocation2] sm:$0x3]  ;;  %v71_v2 = vld [vmem:[#allocation7 + $0x48] sm:$0x7]  ;;  %s903_s0 = smov 53   ;;  %v68_v5 = vld [vmem:[#allocation7 + $0x30] sm:$0xff] }
  0x28   :  { %719 = vmatprep.subr.mxu1 %v901_v0  ;;  %723 = vmatprep.mubr.msk.f32.mxu1 %vm902_vm0, %v901_v0  ;;  %v69_v4 = vld [vmem:[#allocation7 + $0x38] sm:$0xff]  ;;  %v67_v6 = vld [vmem:[#allocation7 + $0x28] sm:$0xff]  ;;  %v66_v7 = vld [vmem:[#allocation7 + $0x20] sm:$0xff]  ;;  %vm76_vm2 = vcmask 613376   ;;  %vm163_vm3 = vcmask 89088   ;;  %vm416_vm4 = vcmask 261120  }
  0x29   :  { %161 = vrot.lane.b32.xlu0 %v55_v1, %s903_s0  ;;  %690 = vmatpush3.msk.msra.mxu0 %vm80_vm1, %v71_v2  ;;  %v65_v8 = vld [vmem:[#allocation7 + $0x18] sm:$0xff]  ;;  %v64_v9 = vld [vmem:[#allocation7 + $0x10] sm:$0xff]  ;;  %v63_v10 = vld [vmem:[#allocation7 + $0x8] sm:$0xff]  ;;  %vm255_vm5 = vcmask 1041408   ;;  %vm251_vm6 = vcmask 80896   ;;  %s904_s2 = smov 64  }
  0x2a   :  { %691 = vmatprep.subr.mxu0 %v901_v0  ;;  %v62_v11 = vld [vmem:[#allocation7] sm:$0xff]  ;;  %v156_v12 = vld [vmem:[#allocation7 + $0xd0] sm:$0x7]  ;;  %v155_v13 = vld [vmem:[#allocation7 + $0xc8] sm:$0xff]  ;;  %s905_s5 = smov 32   ;;  %vm329_vm7 = vcmask 588800  }
  0x2b   :  { %692 = vmatpush3.msra.mxu0 %v70_v3  ;;  %v411_v14 = vld [vmem:[#allocation7 + $0xc0] sm:$0xff]  ;;  %v410_v16 = vld [vmem:[#allocation7 + $0xb8] sm:$0xff]  ;;  %v409_v17 = vld [vmem:[#allocation7 + $0xb0] sm:$0xff]  ;;  %s906_s6 = smov 96   ;;  %vm523_vm8 = vcmask 254976   ;;  %s907_s7 = smov [#allocation9]  }
  0x2c   :  { %693 = vmatprep.subr.mxu0 %v901_v0  ;;  %v408_v18 = vld [vmem:[#allocation7 + $0xa8] sm:$0xff]  ;;  %v56_v19 = vld [vmem:[#allocation5] sm:$0x3]  ;;  %v250_v20 = vld [vmem:[#allocation7 + $0xa0] sm:$0x3]  ;;  %s623_s8 = sshll.u32 %s907_s7, 4  ;;  %s624_s8 = int_to_ptr.vmem [resolvable:$true] %s623_s8 }
  0x2d   :  { %694 = vmatpush3.msra.mxu0 %v69_v4  ;;  %720 = vmatpush3.msk.msra.mxu1 %vm255_vm5, %v250_v20  ;;  %v249_v21 = vld [vmem:[#allocation7 + $0x98] sm:$0xff]  ;;  %v248_v29 = vld [vmem:[#allocation7 + $0x90] sm:$0xff]  ;;  %v247_v30 = vld [vmem:[#allocation7 + $0x88] sm:$0xff]  ;;  %s848_s9 = scalar_lea.vmem %s624_s8, 32  ;;  %p853_p2 = scmp.lt.s32.totalorder %s624_s8, %s624_s8 }
  0x2e   :  { %695 = vmatprep.subr.mxu0 %v901_v0  ;;  %721 = vmatprep.subr.mxu1 %v901_v0  ;;  %v640_v24 = vld [vmem:[#allocation7 + $0xf9] ss:$0 sm:$0xff]  ;;  %v647_v31 = vld [vmem:[#allocation7 + $0xfb] ss:$0 sm:$0xff]  ;;  %v246_v32 = vld [vmem:[#allocation7 + $0x80] sm:$0xff]  ;;  %p849_p1 = scmp.ne.s32.totalorder %s624_s8, %s848_s9  ;;  %p854_p3 = scmp.lt.s32.totalorder %s848_s9, %s848_s9 }
  0x2f   :  { %696 = vmatpush3.msra.mxu0 %v68_v5  ;;  %722 = vmatpush3.msra.mxu1 %v249_v21  ;;  %v245_v34 = vld [vmem:[#allocation7 + $0x78] sm:$0xff]  ;;  %v244_v37 = vld [vmem:[#allocation7 + $0x70] sm:$0xff]  ;;  %v243_v38 = vld [vmem:[#allocation7 + $0x68] sm:$0xff] }
  0x30   :  { %697 = vmatprep.subr.mxu0 %v901_v0  ;;  %726 = vmatprep.subr.mxu1 %v901_v0  ;;  %v637_v39 = vld [vmem:[#allocation7 + $0xf8] ss:$0 sm:$0xff]  ;;  %v242_v40 = vld [vmem:[#allocation7 + $0x60] sm:$0xff]  ;;  %v240_v43 = vld [vmem:[#allocation7 + $0x50] sm:$0xff]  ;;  %p855_p4 = por %p854_p3, %p853_p2 }
  0x31   :  { %698 = vmatpush3.msra.mxu0 %v67_v6  ;;  %v241_v42 = vld [vmem:[#allocation7 + $0x58] sm:$0xff]  ;;  %v528_v61 = vld [vmem:[#allocation7 + $0xf0] sm:$0xff]  ;;  %v527_v62 = vld [vmem:[#allocation7 + $0xe8] sm:$0xff] }
  0x32   :  { %699 = vmatprep.subr.mxu0 %v901_v0  ;;  %v646_v47 = vld [vmem:[#allocation7 + $0xfa] ss:$0 sm:$0xff]  ;;  %v526_v63 = vld [vmem:[#allocation7 + $0xe0] sm:$0xff]  ;;  %p856_p5 = pnand %p855_p4, %p849_p1 }
  0x33   :  { %700 = vmatpush3.msra.mxu0 %v66_v7 }
  0x34   :  { %701 = vmatprep.subr.mxu0 %v901_v0 }
  0x35   :  { %702 = vmatpush3.msra.mxu0 %v65_v8 }
  0x36   :  { %703 = vmatprep.subr.mxu0 %v901_v0 }
  0x37   :  { %704 = vmatpush3.msra.mxu0 %v64_v9 }
  0x38   :  { %705 = vmatprep.subr.mxu0 %v901_v0 }
  0x39   :  { %706 = vmatpush3.msra.mxu0 %v63_v10 }
  0x3a   :  { %707 = vmatprep.subr.mxu0 %v901_v0 }
  0x3b   :  { %708 = vmatpush3.msra.mxu0 %v62_v11 }
  0x3c   :  { %710 = vmatmul.mubr.msk.f32.vlgmr.msra.gmra.mxu0 %vm76_vm2, %v55_v1  ;;  %712 = vmatprep.subr.mxu0 %v901_v0  ;;  %v525_v1 = vld [vmem:[#allocation7 + $0xd8] sm:$0xff] }
  0x3d   :  { %713 = vmatpush3.msk.msra.mxu0 %vm80_vm1, %v156_v12  ;;  %716 = vmatprep.mubr.msk.f32.mxu0 %vm902_vm0, %v901_v0 }
  0x3e   :  { %714 = vmatprep.subr.mxu0 %v901_v0 }
  0x3f   :  { %715 = vmatpush3.msra.mxu0 %v155_v13 }
  0x40   :  { %747 = vmatprep.subr.mxu0 %v901_v0 }
  0x9b   :  { %v162_v15 = vpop.permute.xlu0 %161 }
  0x9c   :  { %717 = vmatmul.mubr.msk.f32.vlgmr.msra.gmra.mxu0 %vm163_vm3, %v162_v15 }
  0x9d   :  { %748 = vmatpush3.msra.mxu0 %v411_v14  ;;  %755 = vmatprep.mubr.msk.f32.mxu0 %vm902_vm0, %v901_v0 }
  0x9e   :  { %749 = vmatprep.subr.mxu0 %v901_v0 }
  0x9f   :  { %750 = vmatpush3.msra.mxu0 %v410_v16 }
  0xa0   :  { %751 = vmatprep.subr.mxu0 %v901_v0 }
  0xa1   :  { %752 = vmatpush3.msra.mxu0 %v409_v17 }
  0xa2   :  { %753 = vmatprep.subr.mxu0 %v901_v0 }
  0xa3   :  { %754 = vmatpush3.msra.mxu0 %v408_v18 }
  0xa4   :  { %756 = vmatmul.mubr.msk.f32.vlgmr.msra.gmra.mxu0 %vm416_vm4, %v56_v19 }
  0xfc   :  { %v150_v22 = vpop.f32.mrf.mxu0 }
  0xfd   :  { %v151_v41 = vadd.f32 %v637_v39, %v150_v22 }
  0xfe   :  { %v711_v23 = vpop.f32.mrf.mxu0 }
  0xff   :  { %v154_v44 = vmax.f32 %v151_v41, 0.0 }
 0x15c   :  { %v235_v25 = vpop.f32.mrf.mxu0 }
 0x15d   :  { %v236_v26 = vadd.f32 %v640_v24, %v235_v25 }
 0x15e   :  { %v718_v27 = vpop.f32.mrf.mxu0 }
 0x15f   :  { %v239_v28 = vmax.f32 %v236_v26, 0.0 }
 0x161   :  { %724 = vmatmul.mubr.msk.f32.vlgmr.msra.gmra.mxu1 %vm251_vm6, %v239_v28 }
 0x162   :  { %727 = vmatpush3.msra.mxu1 %v248_v29  ;;  %744 = vmatprep.mubr.msk.f32.mxu1 %vm902_vm0, %v901_v0 }
 0x163   :  { %728 = vmatprep.subr.mxu1 %v901_v0 }
 0x164   :  { %729 = vmatpush3.msra.mxu1 %v247_v30  ;;  %v486_v33 = vpop.f32.mrf.mxu0 }
 0x165   :  { %730 = vmatprep.subr.mxu1 %v901_v0  ;;  %v487_v35 = vadd.f32 %v647_v31, %v486_v33 }
 0x166   :  { %731 = vmatpush3.msra.mxu1 %v246_v32  ;;  %v757_v36 = vpop.f32.mrf.mxu0 }
 0x167   :  { %732 = vmatprep.subr.mxu1 %v901_v0  ;;  %498 = vrot.lane.b32.xlu0 %v487_v35, %s904_s2 }
 0x168   :  { %733 = vmatpush3.msra.mxu1 %v245_v34 }
 0x169   :  { %734 = vmatprep.subr.mxu1 %v901_v0 }
 0x16a   :  { %735 = vmatpush3.msra.mxu1 %v244_v37 }
 0x16b   :  { %736 = vmatprep.subr.mxu1 %v901_v0  ;;  %514 = vrot.lane.b32.xlu0 %v56_v19, %s905_s5 }
 0x16c   :  { %737 = vmatpush3.msra.mxu1 %v243_v38 }
 0x16d   :  { %738 = vmatprep.subr.mxu1 %v901_v0 }
 0x16e   :  { %739 = vmatpush3.msra.mxu1 %v242_v40 }
 0x16f   :  { %740 = vmatprep.subr.mxu1 %v901_v0 }
 0x170   :  { %741 = vmatpush3.msra.mxu1 %v241_v42 }
 0x171   :  { %742 = vmatprep.subr.mxu1 %v901_v0 }
 0x172   :  { %743 = vmatpush3.msra.mxu1 %v240_v43 }
 0x173   :  { %745 = vmatmul.mubr.msk.f32.vlgmr.msra.gmra.mxu1 %vm329_vm7, %v154_v44  ;;  %758 = vmatprep.subr.mxu1 %v901_v0 }
 0x174   :  { %766 = vmatprep.mubr.msk.f32.mxu1 %vm902_vm0, %v901_v0  ;;  %759 = vmatpush3.msra.mxu1 %v528_v61 }
 0x175   :  { %760 = vmatprep.subr.mxu1 %v901_v0 }
 0x176   :  { %761 = vmatpush3.msra.mxu1 %v527_v62 }
 0x177   :  { %762 = vmatprep.subr.mxu1 %v901_v0 }
 0x178   :  { %763 = vmatpush3.msra.mxu1 %v526_v63 }
 0x179   :  { %764 = vmatprep.subr.mxu1 %v901_v0 }
 0x17a   :  { %765 = vmatpush3.msra.mxu1 %v525_v1 }
 0x1d9   :  { %v499_v57 = vpop.permute.xlu0 %498 }
 0x1dd   :  { %v515_v3 = vpop.permute.xlu0 %514 }
 0x221   :  { %v325_v45 = vpop.f32.mrf.mxu1 }
 0x223   :  { %v725_v46 = vpop.f32.mrf.mxu1 }
 0x233   :  { %v399_v48 = vpop.f32.mrf.mxu1 }
 0x234   :  { %v400_v49 = vadd.f32 %v399_v48, %v325_v45 }
 0x235   :  { %v746_v50 = vpop.f32.mrf.mxu1 }
 0x236   :  { %v407_v51 = vadd.f32 %v646_v47, %v400_v49 }
 0x238   :  { %v490_v52 = vadd.f32 %v487_v35, %v407_v51 }
 0x23a   :  { %v649_v53 = vmul.f32 -1.442695, %v490_v52 }
 0x23c   :  { %782 = vpow2.f32 %v649_v53 }
 0x249   :  { %v783_v54 = vpop.eup %782 }
 0x24a   :  { %v494_v55 = vadd.f32 1.0, %v783_v54 }
 0x24c   :  { %784 = vrcp.f32 %v494_v55 }
 0x259   :  { %v785_v56 = vpop.eup %784 }
 0x25a   :  { %v501_v58 = vmul.f32 %v785_v56, %v499_v57  ;;  %v508_v4 = vsub.f32 1.0, %v785_v56  ;;  %v517_v6 = vmul.f32 %v785_v56, %v515_v3 }
 0x25c   :  { %503 = vrot.lane.b32.xlu1 %v501_v58, %s904_s2 }
 0x2ce   :  { %v504_v59 = vpop.permute.xlu1 %503 }
 0x2cf   :  { %v506_v60 = vadd.f32 %v504_v59, %v407_v51 }
 0x2d1   :  { %786 = vtanh.f32 %v506_v60 }
 0x2de   :  { %v787_v2 = vpop.eup %786 }
 0x2df   :  { %510 = vrot.lane.b32.xlu1 %v787_v2, %s906_s6 }
 0x351   :  { %v511_v5 = vpop.permute.xlu1 %510 }
 0x352   :  { %v513_v7 = vmul.f32 %v511_v5, %v508_v4 }
 0x354   :  { %v518_v8 = vadd.f32 %v517_v6, %v513_v7 }
 0x356   :  { %520 = vrot.lane.b32.xlu1 %v518_v8, %s906_s6 }
 0x3c8   :  { %v521_v9 = vpop.permute.xlu1 %520 }
 0x3c9   :  { %767 = vmatmul.mubr.msk.f32.vlgmr.msra.gmra.mxu1 %vm416_vm4, %v521_v9  ;;  %524 = vst.msk [vmem:[#allocation9] sm:$0x3] %vm523_vm8, %v521_v9 }
 0x3ca   :  { %859 = shalt.err (!%p856_p5)
}
 0x3cb   :  { %626 = dma.vmem_to_hbm [thread:$0]  %s624_s8, 32, %s1002_s4, [#allocation10]   ;;  %v650_v0 = vld [vmem:[#allocation7 + $0xfc] ss:$0 sm:$0xff]  ;;  %vm605_vm9 = vcmask 33792  }
 0x3cc   :  { %s908_s12 = smov [#allocation8]  }
 0x3cd   :  { %s613_s13 = sshll.u32 %s908_s12, 4  ;;  %s614_s13 = int_to_ptr.vmem [resolvable:$true] %s613_s13 }
 0x3ce   :  { %s868_s14 = scalar_lea.vmem %s614_s13, 32  ;;  %p873_p7 = scmp.lt.s32.totalorder %s614_s13, %s614_s13 }
 0x3cf   :  { %p869_p6 = scmp.ne.s32.totalorder %s614_s13, %s868_s14  ;;  %p874_p8 = scmp.lt.s32.totalorder %s868_s14, %s868_s14 }
 0x3d1   :  { %p875_p9 = por %p874_p8, %p873_p7 }
 0x3d3   :  { %p876_p10 = pnand %p875_p9, %p869_p6 }
 0x489   :  { %v601_v10 = vpop.f32.mrf.mxu1 }
 0x48a   :  { %v602_v11 = vadd.f32 %v650_v0, %v601_v10 }
 0x48b   :  { %v768_v12 = vpop.f32.mrf.mxu1 }
 0x48c   :  { %606 = vst.msk [vmem:[#allocation8] sm:$0x3] %vm605_vm9, %v602_v11 }
 0x48d   :  { %879 = shalt.err (!%p876_p10)
}
 0x48e   :  { %616 = dma.vmem_to_hbm [thread:$0]  %s614_s13, 32, %s1001_s3, [#allocation4]  }
 0x48f   :  { %892 = dma.done.wait [#allocation4], 32  }
 0x490   :  { %893 = vsyncadd [#allocation4], 4294967264 }
 0x491   :  { %894 = dma.done.wait [#allocation10], 32  }
 0x492   :  { %895 = vsyncadd [#allocation10], 4294967264 }
 0x493   :  { %633 = vsyncpa [#allocation3], 1 }
 0x494   :  { %634 = vsyncpa [#allocation6], 1 }
 0x495   :  { %635 = vsyncpa [#allocation4], 1 }
 0x496   :  { %636 = vsyncpa [#allocation10], 1 }

</bundles_post_ra>
